<compile_context>
chip_gen: v7x
topology: tpu7x:2x2x1
jax: 0.10.0
libtpu: 0.0.40
codegen_flags: <defaults>
</compile_context>

<pallas_src>
import jax
import jax.numpy as jnp
import numpy as np
from jax import lax
from jax.experimental import pallas as pl
from jax.experimental.pallas import tpu as pltpu


# ---------------------------------------------------------------------------
# Pass 1:  p[N, CL] = masks[N, HW] @ W_eff[HW, CL] + b[1, CL]
# Grid (N/tn, CL/tcl, HW/thw); HW is the innermost "arbitrary" reduction and
# the (tn, tcl) f32 output block is resident across it.
# ---------------------------------------------------------------------------
def p_kernel(masks_ref, w_ref, b_ref, p_ref):
    k = pl.program_id(2)

    @pl.when(k == 0)
    def _():
        p_ref[...] = jnp.zeros_like(p_ref)

    # bf16 operands, f32 accumulation on the MXU.
    p_ref[...] += jnp.dot(masks_ref[...], w_ref[...],
                          preferred_element_type=jnp.float32)

    @pl.when(k == pl.num_programs(2) - 1)
    def _():
        p_ref[...] += b_ref[...]          # (1, tcl) broadcasts over tn rows


# ---------------------------------------------------------------------------
# Pass 2:  sal[CL, HW] = p[N, CL]^T @ masks[N, HW]
# Grid (CL/tcl, HW/thw, N/tn); N is the innermost "arbitrary" reduction and
# the (tcl, thw) f32 output block is resident across it.
# p stays f32 for accuracy; masks are upcast bf16->f32 in VMEM so their HBM
# traffic stays bf16.
# ---------------------------------------------------------------------------
def sal_kernel(p_ref, masks_ref, sal_ref):
    @pl.when(pl.program_id(2) == 0)
    def _():
        sal_ref[...] = jnp.zeros_like(sal_ref)

    sal_ref[...] += lax.dot_general(
        p_ref[...], masks_ref[...].astype(jnp.float32),
        dimension_numbers=(((0,), (0,)), ((), ())),   # contract the N axis
        preferred_element_type=jnp.float32)


def _pick_tile(dim, want, align):
    """Largest t <= want with t % align == 0 and dim % t == 0, else the full dim.

    Full-extent blocks are always legal; returning a divisor means the big
    streamed arrays never need padding (no extra HBM copy)."""
    want = min(want, dim)
    t = want - want % align
    while t >= align:
        if dim % t == 0:
            return t
        t -= align
    return dim


def _vmem_limit(block_bytes):
    # blocks are already counted with double-buffering; leave 2x slack, but
    # never exceed ~60 MiB (v7x physical VMEM is 64 MiB).
    return int(min(max(2 * block_bytes, 4 << 20), 60 << 20))


def rise_forward(masks, x, w_cls, b_cls, p1, *, tn=512, tcl=256, thw=512):
    """masks: (N, H, W), x: (1, C, H, W), w_cls: (C, H*W, CL), b_cls: (1, CL)
    -> sal: (CL, H, W), matching the torch forward with a linear `model`."""
    N, H, W = masks.shape
    _, C, _, _ = x.shape
    CL = w_cls.shape[-1]
    HW = H * W
    scale = 1.0 / float(N) / float(p1)

    masks_flat = masks.reshape(N, HW).astype(jnp.float32)
    x_flat = x[0].reshape(C, HW).astype(jnp.float32)

    # Algebraic collapse of the per-mask linear model (x fixed, batch=1),
    # with the 1/(N*p1) scale folded in.
    w_eff = jnp.einsum("ck,ckl->kl", x_flat, w_cls.astype(jnp.float32)) * scale
    b_eff = b_cls.astype(jnp.float32).reshape(1, CL) * scale

    # bf16 operands for the streamed arrays (MXU fast path, half the HBM
    # traffic); p and sal accumulate in f32.
    masks_bf = masks_flat.astype(jnp.bfloat16)
    w_eff_bf = w_eff.astype(jnp.bfloat16)

    # Tile sizes: divisors of the extents so masks are never padded.  Only the
    # small W_eff / bias get CL padding (padded columns are zero -> padded p
    # columns are zero -> padded sal rows are zero, sliced off at the end).
    tn = _pick_tile(N, tn, 8)
    thw = _pick_tile(HW, thw, 128)
    if CL <= tcl:
        tcl = CL
        CLp = CL
    else:
        CLp = pl.cdiv(CL, tcl) * tcl
        if CLp != CL:
            w_eff_bf = jnp.pad(w_eff_bf, ((0, 0), (0, CLp - CL)))
            b_eff = jnp.pad(b_eff, ((0, 0), (0, CLp - CL)))
    n_n, n_cl, n_hw = N // tn, CLp // tcl, HW // thw

    # ------------------------- pass 1: p = masks @ W_eff + b ----------------
    p1_block_bytes = 2 * (tn * thw * 2) + 2 * (thw * tcl * 2) \
        + 2 * (tcl * 4) + 2 * (tn * tcl * 4)
    p = pl.pallas_call(
        p_kernel,
        out_shape=jax.ShapeDtypeStruct((N, CLp), jnp.float32),
        grid_spec=pltpu.PrefetchScalarGridSpec(
            num_scalar_prefetch=0,
            grid=(n_n, n_cl, n_hw),
            in_specs=[
                pl.BlockSpec((tn, thw), lambda i, j, k: (i, k)),    # masks
                pl.BlockSpec((thw, tcl), lambda i, j, k: (k, j)),   # W_eff
                pl.BlockSpec((1, tcl), lambda i, j, k: (0, j)),     # bias (tiny)
            ],
            out_specs=pl.BlockSpec((tn, tcl), lambda i, j, k: (i, j)),
        ),
        compiler_params=pltpu.CompilerParams(
            dimension_semantics=("parallel", "parallel", "arbitrary"),
            vmem_limit_bytes=_vmem_limit(p1_block_bytes)),
        cost_estimate=pl.CostEstimate(
            flops=2 * N * HW * CLp, transcendentals=0,
            bytes_accessed=N * HW * 2 * n_cl + HW * CLp * 2 * n_n + N * CLp * 4),
    )(masks_bf, w_eff_bf, b_eff)

    # ------------------------- pass 2: sal = p^T @ masks --------------------
    p2_block_bytes = 2 * (tn * tcl * 4) + 2 * (tn * thw * 2) + 2 * (tcl * thw * 4)
    sal_flat = pl.pallas_call(
        sal_kernel,
        out_shape=jax.ShapeDtypeStruct((CLp, HW), jnp.float32),
        grid_spec=pltpu.PrefetchScalarGridSpec(
            num_scalar_prefetch=0,
            grid=(n_cl, n_hw, n_n),
            in_specs=[
                pl.BlockSpec((tn, tcl), lambda j, h, i: (i, j)),    # p (f32)
                pl.BlockSpec((tn, thw), lambda j, h, i: (i, h)),    # masks
            ],
            out_specs=pl.BlockSpec((tcl, thw), lambda j, h, i: (j, h)),
        ),
        compiler_params=pltpu.CompilerParams(
            dimension_semantics=("parallel", "parallel", "arbitrary"),
            vmem_limit_bytes=_vmem_limit(p2_block_bytes)),
        cost_estimate=pl.CostEstimate(
            flops=2 * CLp * N * HW, transcendentals=0,
            bytes_accessed=N * CLp * 4 * n_hw + N * HW * 2 * n_cl + CLp * HW * 4),
    )(p, masks_bf)

    return sal_flat[:CL].reshape(CL, H, W)


def generate_masks(key, N, s, p1, input_size):
    """Deterministic JAX analogue of RISEModule.generate_masks."""
    H, W = input_size
    cell_h = int(np.ceil(H / s))
    cell_w = int(np.ceil(W / s))
    up_h, up_w = (s + 1) * cell_h, (s + 1) * cell_w

    k_grid, k_x, k_y = jax.random.split(key, 3)
    grid = (jax.random.uniform(k_grid, (N, s, s)) < p1).astype(jnp.float32)
    up = jax.image.resize(grid, (N, up_h, up_w), method="bilinear")
    xs = jax.random.randint(k_x, (N,), 0, cell_h)
    ys = jax.random.randint(k_y, (N,), 0, cell_w)

    # TODO(synk): skimage reflect-mode resize differs slightly from bilinear
    # jax.image.resize; mask *values* differ but forward semantics are identical.
    def crop(u, x0, y0):
        return lax.dynamic_slice(u, (x0, y0), (H, W))

    return jax.vmap(crop)(up, xs, ys)  # (N, H, W)


if __name__ == "__main__":
    # Small but tiling-exercising: 2 tiles along every grid axis of both passes
    # (N=256/tn=128, CL=256/tcl=128 -> 2 "parallel" CL tiles for v7x megacore,
    # HW=16*16=256/thw=128 so the HW tiling path is exercised).
    N, C, H, W, CL = 256, 4, 16, 16, 256
    s, p1 = 4, 0.5
    HW = H * W

    key = jax.random.PRNGKey(0)
    k_mask, k_x, k_w, k_b = jax.random.split(key, 4)

    masks = generate_masks(k_mask, N, s, p1, (H, W))            # (N, H, W)
    x = jax.random.normal(k_x, (1, C, H, W), dtype=jnp.float32)

    # Synthetic deterministic "model": linear classifier over flattened input.
    w_cls = jax.random.normal(k_w, (C, HW, CL), dtype=jnp.float32) * 0.02
    b_cls = jax.random.normal(k_b, (1, CL), dtype=jnp.float32) * 0.1

    sal = rise_forward(masks, x, w_cls, b_cls, p1, tn=128, tcl=128, thw=128)
    sal = jax.block_until_ready(sal)
    assert sal.shape == (CL, H, W)

    # Reference (numpy f32 math) with the SAME bf16 quantization of the streamed
    # operands (masks, W_eff); p stays f32, exactly as in the kernels.
    scale = 1.0 / N / p1
    masks_f = np.asarray(masks.reshape(N, HW), dtype=np.float32)
    w_eff = np.asarray(
        jnp.einsum("ck,ckl->kl", x[0].reshape(C, HW), w_cls) * scale)
    mb = np.asarray(jnp.asarray(masks_f).astype(jnp.bfloat16).astype(jnp.float32))
    wb = np.asarray(jnp.asarray(w_eff).astype(jnp.bfloat16).astype(jnp.float32))
    bb = np.asarray(b_cls, dtype=np.float32) * scale
    p_ref = mb @ wb + bb                                         # (N, CL) f32
    sal_ref = (p_ref.T @ mb).reshape(CL, H, W)

    np.testing.assert_allclose(np.asarray(sal), sal_ref, rtol=5e-3, atol=5e-4)
    print("KERNEL_OK")
</pallas_src>

<mosaic_0001>
module attributes {stable_mosaic.version = 11 : i64} {
  func.func @p_kernel(%arg0: i32, %arg1: i32, %arg2: i32, %arg3: memref<128x128xbf16, #tpu.memory_space<vmem>>, %arg4: memref<128x128xbf16, #tpu.memory_space<vmem>>, %arg5: memref<1x128xf32, #tpu.memory_space<vmem>>, %arg6: memref<128x128xf32, #tpu.memory_space<vmem>>) attributes {dimension_semantics = [#tpu.dimension_semantics<parallel>, #tpu.dimension_semantics<parallel>, #tpu.dimension_semantics<arbitrary>], iteration_bounds = array<i64: 2, 2, 2>, scalar_prefetch = 0 : i64, scratch_operands = 0 : i64, tpu.core_type = #tpu.core_type<tc>, window_params = [{transform_indices = @transform_0, window_bounds = array<i64: 128, 128>}, {transform_indices = @transform_1, window_bounds = array<i64: 128, 128>}, {transform_indices = @transform_2, window_bounds = array<i64: 1, 128>}, {transform_indices = @transform_3, window_bounds = array<i64: 128, 128>}]} {
    %c0_i32 = arith.constant 0 : i32
    %0 = arith.cmpi eq, %arg2, %c0_i32 : i32
    %1 = arith.extui %0 : i1 to i32
    %c0_i32_0 = arith.constant 0 : i32
    %2 = arith.cmpi ne, %1, %c0_i32_0 : i32
    scf.if %2 {
      %cst_9 = arith.constant 0.000000e+00 : f32
      %12 = vector.broadcast %cst_9 : f32 to vector<128x128xf32>
      %c0_10 = arith.constant 0 : index
      %c0_11 = arith.constant 0 : index
      %13 = vector.load %arg6[%c0_10, %c0_11] : memref<128x128xf32, #tpu.memory_space<vmem>>, vector<128x128xf32>
      tpu.vector_store %arg6[%c0_10, %c0_11], %12 {strides = array<i32>} : memref<128x128xf32, #tpu.memory_space<vmem>>, vector<128x128xf32>,
    } else {
    }
    %c0 = arith.constant 0 : index
    %c0_1 = arith.constant 0 : index
    %3 = vector.load %arg6[%c0, %c0_1] : memref<128x128xf32, #tpu.memory_space<vmem>>, vector<128x128xf32>
    %c0_2 = arith.constant 0 : index
    %c0_3 = arith.constant 0 : index
    %4 = vector.load %arg3[%c0_2, %c0_3] : memref<128x128xbf16, #tpu.memory_space<vmem>>, vector<128x128xbf16>
    %c0_4 = arith.constant 0 : index
    %c0_5 = arith.constant 0 : index
    %5 = vector.load %arg4[%c0_4, %c0_5] : memref<128x128xbf16, #tpu.memory_space<vmem>>, vector<128x128xbf16>
    %cst = arith.constant dense<0.000000e+00> : vector<128x128xf32>
    %6 = tpu.matmul %4, %5, %cst {dimension_numbers = #tpu.dot_dimension_numbers<[1], [0], [0], [1], [0, 0, 1, 1], [], []>} : vector<128x128xbf16>, vector<128x128xbf16>, vector<128x128xf32> -> vector<128x128xf32>
    %7 = arith.addf %3, %6 : vector<128x128xf32>
    %c0_6 = arith.constant 0 : index
    %c0_7 = arith.constant 0 : index
    %8 = vector.load %arg6[%c0_6, %c0_7] : memref<128x128xf32, #tpu.memory_space<vmem>>, vector<128x128xf32>
    tpu.vector_store %arg6[%c0_6, %c0_7], %7 {strides = array<i32>} : memref<128x128xf32, #tpu.memory_space<vmem>>, vector<128x128xf32>,
    %c1_i32 = arith.constant 1 : i32
    %9 = arith.cmpi eq, %arg2, %c1_i32 : i32
    %10 = arith.extui %9 : i1 to i32
    %c0_i32_8 = arith.constant 0 : i32
    %11 = arith.cmpi ne, %10, %c0_i32_8 : i32
    scf.if %11 {
      %c0_9 = arith.constant 0 : index
      %c0_10 = arith.constant 0 : index
      %12 = vector.load %arg6[%c0_9, %c0_10] : memref<128x128xf32, #tpu.memory_space<vmem>>, vector<128x128xf32>
      %c0_11 = arith.constant 0 : index
      %c0_12 = arith.constant 0 : index
      %13 = vector.load %arg5[%c0_11, %c0_12] : memref<1x128xf32, #tpu.memory_space<vmem>>, vector<1x128xf32>
      %14 = vector.broadcast %13 : vector<1x128xf32> to vector<128x128xf32>
      %15 = arith.addf %12, %14 : vector<128x128xf32>
      %c0_13 = arith.constant 0 : index
      %c0_14 = arith.constant 0 : index
      %16 = vector.load %arg6[%c0_13, %c0_14] : memref<128x128xf32, #tpu.memory_space<vmem>>, vector<128x128xf32>
      tpu.vector_store %arg6[%c0_13, %c0_14], %15 {strides = array<i32>} : memref<128x128xf32, #tpu.memory_space<vmem>>, vector<128x128xf32>,
    } else {
    }
    return
  }
  func.func @transform_0(%arg0: i32, %arg1: i32, %arg2: i32) -> (i32, i32) {
    %c0_i32 = arith.constant 0 : i32
    return %arg0, %arg2 : i32, i32
  }
  func.func @transform_1(%arg0: i32, %arg1: i32, %arg2: i32) -> (i32, i32) {
    %c0_i32 = arith.constant 0 : i32
    return %arg2, %arg1 : i32, i32
  }
  func.func @transform_2(%arg0: i32, %arg1: i32, %arg2: i32) -> (i32, i32) {
    %c0_i32 = arith.constant 0 : i32
    %c0_i32_0 = arith.constant 0 : i32
    return %c0_i32, %arg1 : i32, i32
  }
  func.func @transform_3(%arg0: i32, %arg1: i32, %arg2: i32) -> (i32, i32) {
    %c0_i32 = arith.constant 0 : i32
    return %arg0, %arg1 : i32, i32
  }
}

</mosaic_0001>

<bundles_post_ra>
// kernel: tpu_custom_call.1
= control target key start
LH: loop header
LB: loop body
LE: loop exit
PB: predicated region body
PF: predicated region fallthrough
CT: control target
= control target key end

     0   :  { %s1813_s0 = inlined_call_operand.hbm [shape: bf16[256,256], index: 0, kind: input, shape index: {}]   ;;  %s1814_s1 = inlined_call_operand.hbm [shape: bf16[256,256], index: 1, kind: input, shape index: {}]   ;;  %s1815_s2 = inlined_call_operand.vmem [shape: f32[1,256], index: 2, kind: input, shape index: {}]   ;;  %s1816_s3 = inlined_call_operand.hbm [shape: f32[256,256], index: 3, kind: output, shape index: {}]  }
   0x1   :  { %1834 = sst [smem:[#allocation18_spill]] %s1813_s0 }
   0x2   :  { %1835 = sst [smem:[#allocation19_spill]] %s1814_s1 }
   0x3   :  { %1836 = sst [smem:[#allocation20_spill]] %s1816_s3 }
   0x4   :  { %8 = vsyncpa [#allocation3], 0 }
   0x5   :  { %10 = vsyncpa [#allocation3 + $0x1], 0 }
   0x6   :  { %11 = vsyncpa [#allocation6], 0 }
   0x7   :  { %13 = vsyncpa [#allocation6 + $0x1], 0 }
   0x8   :  { %14 = vsyncpa [#allocation4], 0 }
   0x9   :  { %16 = vsyncpa [#allocation4 + $0x1], 0  ;;  %s1308_s12 = smov 0   ;;  %s1310_s13 = smov 0  }
   0xa   :  { %s1312_s14 = smov 0   ;;  %s1314_s15 = smov 0  }
   0xb   :  { %s1316_s16 = smov 0   ;;  %s1318_s17 = smov 0  }
   0xc   :  { %s1320_s18 = smov 0   ;;  %s1322_s19 = smov 0  }
   0xd   :  { %s1324_s20 = smov 0   ;;  %s1326_s21 = smov 0  }
   0xe   :  { %s1328_s22 = smov 0   ;;  %s1330_s23 = smov 0  }
   0xf   :  { %s1332_s24 = smov 0   ;;  %s1334_s25 = smov 0  }
  0x10   :  { %s1336_s26 = smov 0   ;;  %s1338_s27 = smov 0  }
  0x11 LB: > { %1837 = sst [smem:[#allocation11_spill]] %s1252_s21  ;;  %s34_s28 = sadd.s32 1, %s1264_s24  ;;  %s1276_s27 = sphi %s1338_s27, %s22_s27   ;;  %s1272_s26 = sphi %s1336_s26, %s1878_s26   ;;  %s1268_s25 = sphi %s1334_s25, %s1891_s25   ;;  %s1264_s24 = sphi %s1332_s24, %s1890_s24   ;;  %s1260_s23 = sphi %s1330_s23, %s1875_s23   ;;  %s1256_s22 = sphi %s1328_s22, %s1889_s22   ;;  %s1252_s21 = sphi %s1326_s21, %s1888_s21   ;;  %s1248_s20 = sphi %s1324_s20, %s1887_s20   ;;  %s1244_s19 = sphi %s1322_s19, %s1886_s19   ;;  %s1240_s18 = sphi %s1320_s18, %s1885_s18   ;;  %s1236_s17 = sphi %s1318_s17, %s1884_s17   ;;  %s1232_s16 = sphi %s1316_s16, %s1883_s16   ;;  %s1228_s15 = sphi %s1314_s15, %s1882_s15   ;;  %s1224_s14 = sphi %s1312_s14, %s1881_s14   ;;  %s1220_s13 = sphi %s1310_s13, %s1880_s13   ;;  %s1216_s12 = sphi %s1308_s12, %s1879_s12  }
  0x12   : > { %1838 = sst [smem:[#allocation12_spill]] %s1260_s23  ;;  %s1817_s29 = sadd.s32 4294967295, %s1276_s27  }
  0x13   : > { %1839 = sst [smem:[#allocation13_spill]] %s1272_s26  ;;  %p1388_p0 = scmp.ge.s32.totalorder %s34_s28, 2 }
  0x14   : > { %p57_p1 = scmp.ne.s32.totalorder %s1248_s20, %s1244_s19  ;;  %p1821_p2 = scmp.eq.s32.totalorder %s1276_s27, 0 }
  0x15   : > { %s1893_s28 = smov (%p1388_p0, %s34_s28), 0  ;;  %p63_p3 = scmp.ne.s32.totalorder %s1244_s19, %s1240_s18 }
  0x16   : > { %1841 = sst [smem:[#allocation14_spill]] %s1893_s28  ;;  %p1404_p4 = scmp.eq.s32.totalorder %s1817_s29, 0 }
  0x17   : > { %s1410_s7 = ssub.s32 %s1264_s24, %s1893_s28  ;;  %p59_p5 = por %p1821_p2, %p57_p1 }
  0x18   : > { %s1842_s6 = scalar_select %p1404_p4, 1, 0 }
  0x19   : > { %p1416_p6 = por %p1404_p4, %p63_p3  ;;  %p1820_p7 = scmp.lt.s32.totalorder %s1276_s27, 8 }
  0x1a   : > { %s169_s9 = sand.u32 1, %s1248_s20   ;;  %s813_s11 = sshll.u32 %s1272_s26, 5 }
  0x1b   : > { %s1843_s8 = scalar_select %p1416_p6, 1, 0 }
  0x1c   : > { %s776_s10 = sshll.u32 %s169_s9, 6  ;;  %s179_s18 = sadd.s32 %s1264_s24, %s813_s11 }
  0x1d   : > { %s173_s5 = scalar_lea.vmem [#allocation2], %s776_s10  ;;  %s779_s29 = sshll.u32 %s179_s18, 6 }
  0x1e   : > { %s182_s4 = sshll.u32 %s173_s5, 4  ;;  %s1844_s0 = sld [smem:[#allocation18_spill]]  ;;  %s1424_s4 = int_to_ptr.vmem [resolvable:$true] %s182_s4 }
  0x1f   : > { %p1433_p8 = pnand %p1820_p7, %p59_p5  ;;  %s1437_s5 = scalar_lea.sflag [#allocation3], %s169_s9 }
  0x21   : > { %p1052_p10 = pneg %p1433_p8 }
  0x24   : > { %s1429_s23 = scalar_lea.hbm %s1844_s0, %s779_s29  ;;  %s1055_s29 = scalar_lea.hbm %s1844_s0, 4096 }
  0x25   : > { %s1050_s10 = scalar_lea.hbm %s1429_s23, 1024  ;;  %p1056_p13 = scmp.lt.u32.totalorder %s1429_s23, %s1844_s0 }
  0x26   : > { %p1051_p9 = scmp.ne.s32.totalorder %s1429_s23, %s1050_s10  ;;  %p1057_p1 = scmp.lt.u32.totalorder %s1055_s29, %s1050_s10 }
  0x27   : > { %p1059_p5 = scmp.lt.u32.totalorder %s1050_s10, %s1429_s23 }
  0x28   : > { %p1053_p11 = pnand %p1052_p10, %p1051_p9  ;;  %p1058_p3 = por %p1057_p1, %p1056_p13 }
  0x2a   : > { %p1054_p12 = pneg %p1053_p11  ;;  %p1060_p7 = por %p1059_p5, %p1058_p3 }
  0x2c   : > { %p1061_p2 = pnand %p1060_p7, %p1054_p12 }
  0x2e   : > { %1064 = shalt.err (!%p1061_p2)
}
  0x2f   : > { %s1065_s9 = scalar_lea.vmem %s1424_s4, 1024  ;;  %s1278_s3 = smov [#allocation2]  }
  0x30   : > { %p1066_p9 = scmp.ne.s32.totalorder %s1424_s4, %s1065_s9  ;;  %s1070_s28 = sshll.u32 %s1278_s3, 4  ;;  %s1071_s28 = int_to_ptr.vmem [resolvable:$false] %s1070_s28 }
  0x31   : > { %s1072_s11 = scalar_lea.vmem %s1071_s28, 2048  ;;  %p1073_p4 = scmp.lt.s32.totalorder %s1424_s4, %s1071_s28 }
  0x32   : > { %p1068_p11 = pnand %p1066_p9, %p1052_p10  ;;  %p1074_p13 = scmp.lt.s32.totalorder %s1072_s11, %s1065_s9 }
  0x34   : > { %p1069_p6 = pneg %p1068_p11  ;;  %p1075_p1 = por %p1074_p13, %p1073_p4 }
  0x36   : > { %p1076_p3 = pnand %p1075_p1, %p1069_p6 }
  0x38   : > { %1079 = shalt.err (!%p1076_p3)
}
  0x39   : > { %s1824_s10 = smov 128   ;;  %s1825_s29 = smov 64  }
  0x3a   : > { %s1826_s18 = smov 4   ;;  %p784_p2 = scmp.ge.s32.totalorder %s1276_s27, 1 }
  0x3b   : > { %889 = dma.hbm_to_vmem [thread:$0]  (!%p1433_p8), %s1429_s23, 1024, %s1424_s4, %s1437_s5, %s1824_s10, %s1825_s29, %s1826_s18  }
  0x3c   : > { %p219_p4 = scmp.lt.s32.totalorder %s1276_s27, 9  ;;  %s1846_s9 = sadd.s32 4294967295, %s1276_s27  }
  0x3d   : > { %p1472_p6 = scmp.eq.s32.totalorder %s1846_s9, 7  ;;  %s773_s21 = sadd.s32 4294967294, %s1276_s27  }
  0x3e   : > { %p1476_p7 = pnand %p784_p2, %p219_p4  ;;  %s37_s11 = sadd.s32 1, %s1268_s25 }
  0x3f   : > { %s1895_s11 = smov (!%p1388_p0, %s37_s11), %s1268_s25  ;;  %s78_s23 = sadd.s32 1, %s1236_s17 }
  0x40   : > { %p91_p8 = scmp.ne.s32.totalorder %s1232_s16, %s1228_s15  ;;  %p39_p10 = scmp.ge.s32.totalorder %s1895_s11, 2 }
  0x41   : > { %p85_p12 = scmp.ne.s32.totalorder %s1236_s17, %s1232_s16  ;;  %p1849_p5 = scmp.ne.s32.totalorder %s1842_s6, 0 }
  0x42   : > { %s132_s5 = sadd.s32 1, %s1224_s14  ;;  %s1897_s11 = smov (%p39_p10, %s1895_s11), 0 }
  0x43   : > { %p1492_p9 = por %p91_p8, %p1849_p5  ;;  %1851 = sst [smem:[#allocation15_spill]] %s1897_s11 }
  0x44   : > { %s1852_s9 = sadd.s32 1, %s1272_s26  ;;  %s74_s30 = ssub.s32 %s1268_s25, %s1897_s11 }
  0x45   : > { %s1850_s4 = scalar_select %p1492_p9, 1, 0 }
  0x46   : > { %s1899_s9 = smov (!%p39_p10, %s1852_s9), %s1272_s26  ;;  %p142_p0 = scmp.ne.s32.totalorder %s1224_s14, %s1220_s13 }
  0x47   : > { %p43_p11 = scmp.ge.s32.totalorder %s1899_s9, 2  ;;  %s75_s15 = sor.u32 %s74_s30, %s1410_s7 }
  0x48   : > { %p76_p13 = scmp.eq.s32.totalorder %s75_s15, 0  ;;  %p1509_p1 = por %p1472_p6, %p142_p0 }
  0x49   : > { %s1901_s9 = smov (%p43_p11, %s1899_s9), 0  ;;  %p148_p3 = scmp.ne.s32.totalorder %s1220_s13, %s1216_s12 }
  0x4a   : > { %s1853_s6 = scalar_select %p1509_p1, 1, 0 }
  0x4b   : > { %1855 = sst [smem:[#allocation17_spill]] %s1901_s9  ;;  %s45_s29 = ssub.s32 %s1272_s26, %s1901_s9 }
  0x4c   : > { %1854 = sst [smem:[#allocation16_spill]] %s1853_s6  ;;  %s47_s18 = sor.u32 %s1410_s7, %s45_s29 }
  0x4d   : > { %s1516_s10 = scalar_select %p76_p13, %s1236_s17, %s78_s23  }
  0x4e   : > { %s129_s0 = sor.u32 %s74_s30, %s45_s29  ;;  %p48_p2 = scmp.eq.s32.totalorder %s47_s18, 0 }
  0x4f   : > { %p130_p4 = scmp.eq.s32.totalorder %s129_s0, 0  ;;  %p149_p8 = scmp.eq.s32.totalorder %s773_s21, 7 }
  0x50   : > { %s192_s3 = sand.u32 1, %s1236_s17   ;;  %s1856_s15 = sadd.s32 1, %s1248_s20 }
  0x51   : > { %s1527_s11 = scalar_select %p48_p2, %s1248_s20, %s1856_s15  }
  0x52   : > { %s1530_s6 = scalar_select %p130_p4, %s1224_s14, %s132_s5  }
  0x53   : > { %p1857_p6 = scmp.eq.s32.totalorder %s1276_s27, 0  ;;  %p1537_p5 = por %p149_p8, %p148_p3 }
  0x54   : > { %s780_s9 = sshll.u32 %s192_s3, 6  ;;  %s814_s7 = sshll.u32 %s1264_s24, 5 }
  0x55   : > { %p87_p10 = por %p85_p12, %p1857_p6  ;;  %s202_s29 = sadd.s32 %s1268_s25, %s814_s7 }
  0x56   : > { %s1858_s23 = scalar_select %p1537_p5, 1, 0 }
  0x57   : > { %s783_s18 = sshll.u32 %s202_s29, 6  ;;  %s196_s30 = scalar_lea.vmem [#allocation5], %s780_s9 }
  0x58   : > { %s205_s0 = sshll.u32 %s196_s30, 4  ;;  %s1859_s1 = sld [smem:[#allocation19_spill]]  ;;  %s1548_s0 = int_to_ptr.vmem [resolvable:$true] %s205_s0 }
  0x59   : > { %p1860_p12 = scmp.lt.s32.totalorder %s1276_s27, 8  ;;  %s1556_s9 = scalar_lea.sflag [#allocation6], %s192_s3 }
  0x5b   : > { %p1552_p0 = pnand %p1860_p12, %p87_p10 }
  0x5d   : > { %p1082_p13 = pneg %p1552_p0 }
  0x5e   : > { %s1546_s15 = scalar_lea.hbm %s1859_s1, %s783_s18  ;;  %s1085_s18 = scalar_lea.hbm %s1859_s1, 4096 }
  0x5f   : > { %s1080_s7 = scalar_lea.hbm %s1546_s15, 1024  ;;  %p1086_p4 = scmp.lt.u32.totalorder %s1546_s15, %s1859_s1 }
  0x60   : > { %p1081_p11 = scmp.ne.s32.totalorder %s1546_s15, %s1080_s7  ;;  %p1087_p8 = scmp.lt.u32.totalorder %s1085_s18, %s1080_s7 }
  0x61   : > { %p1089_p10 = scmp.lt.u32.totalorder %s1080_s7, %s1546_s15 }
  0x62   : > { %p1083_p3 = pnand %p1082_p13, %p1081_p11  ;;  %p1088_p6 = por %p1087_p8, %p1086_p4 }
  0x64   : > { %p1084_p2 = pneg %p1083_p3  ;;  %p1090_p12 = por %p1089_p10, %p1088_p6 }
  0x66   : > { %p1091_p5 = pnand %p1090_p12, %p1084_p2 }
  0x68   : > { %1094 = shalt.err (!%p1091_p5)
}
  0x69   : > { %s1095_s3 = scalar_lea.vmem %s1548_s0, 1024  ;;  %s1282_s26 = smov [#allocation5]  }
  0x6a   : > { %p1096_p11 = scmp.ne.s32.totalorder %s1548_s0, %s1095_s3  ;;  %s1100_s29 = sshll.u32 %s1282_s26, 4  ;;  %s1101_s29 = int_to_ptr.vmem [resolvable:$false] %s1100_s29 }
  0x6b   : > { %s1102_s30 = scalar_lea.vmem %s1101_s29, 2048  ;;  %p1103_p9 = scmp.lt.s32.totalorder %s1548_s0, %s1101_s29 }
  0x6c   : > { %p1098_p3 = pnand %p1096_p11, %p1082_p13  ;;  %p1104_p4 = scmp.lt.s32.totalorder %s1102_s30, %s1095_s3 }
  0x6e   : > { %p1099_p1 = pneg %p1098_p3  ;;  %p1105_p8 = por %p1104_p4, %p1103_p9 }
  0x70   : > { %p1106_p6 = pnand %p1105_p8, %p1099_p1 }
  0x72   : > { %1109 = shalt.err (!%p1106_p6)
}
  0x73   : > { %s1862_s7 = smov 4   ;;  %s1863_s18 = smov 64  }
  0x74   : > { %s1864_s21 = smov 128   ;;  %223 = sbr.rel (%p1476_p7) target bundleno = 447 (0x1bf), region = 32 }
  0x75   : > { %892 = dma.hbm_to_vmem [thread:$0]  (!%p1552_p0), %s1546_s15, 1024, %s1548_s0, %s1556_s9, %s1864_s21, %s1863_s18, %s1862_s7  }
  0x76   : > { %s225_s26 = sand.u32 (!%p1476_p7), 1, %s1244_s19   ;;  %p1865_p9 = scmp.ne.s32.totalorder (!%p1476_p7), %s1843_s8, 0 }
  0x77   : > { %s785_s29 = sshll.u32 (!%p1476_p7), %s225_s26, 6  ;;  %s226_s3 = scalar_lea.sflag (!%p1476_p7), [#allocation3], %s225_s26 }
  0x78   : > { %s1590_s30 = scalar_lea.vmem (!%p1476_p7), [#allocation2], %s785_s29 }
  0x7b   : > { %1203 = dma.done.wait (%p1865_p9), %s226_s3, 1024  }
  0x7c   : > { %1205 = vsyncadd (%p1865_p9), %s226_s3, 4294966272  ;;  %s234_s5 = sand.u32 1, %s1232_s16   ;;  %p1866_p7 = scmp.ne.s32.totalorder %s1850_s4, 0 }
  0x7d   : > { %s786_s1 = sshll.u32 %s234_s5, 6  ;;  %s235_s0 = scalar_lea.sflag [#allocation6], %s234_s5 }
  0x7e   : > { %s1597_s15 = scalar_lea.vmem [#allocation5], %s786_s1 }
  0x7f   : > { %1207 = dma.done.wait (%p1866_p7), %s235_s0, 1024  }
  0x80   : > { %1209 = vsyncadd (%p1866_p7), %s235_s0, 4294966272  ;;  %s266_s28 = sand.u32 1, %s1220_s13   ;;  %p271_p1 = scmp.lt.s32.totalorder %s1256_s22, 1 }
  0x81   : > { %s787_s8 = sshll.u32 %s266_s28, 7  ;;  %s1867_s26 = sld [smem:[#allocation11_spill]] }
  0x82   : > { %s1608_s9 = scalar_select %p271_p1, %s1256_s22, 1 }
  0x83   : > { %s1614_s21 = scalar_lea.vmem [#allocation7], %s787_s8 }
  0x84   : > { %s273_s1 = scalar_lea.vmem %s1815_s2, %s1608_s9 }
  0x87   : > { %p788_p5 = scmp.ne.s32.totalorder %s1867_s26, 0 }
  0x88   : > { %v1283_v0 = vmov (!%p788_p5), 0.0  }
  0x89   : > { %279 = sbr.rel (%p788_p5) target bundleno = 145 (0x91), region = 44  ;;  %280 = vst [vmem:[%s1614_s21] sm:$0xff] (!%p788_p5), %v1283_v0  ;;  %281 = vst [vmem:[%s1614_s21 + $0x8] sm:$0xff] (!%p788_p5), %v1283_v0 }
  0x8a   : > { %282 = vst [vmem:[%s1614_s21 + $0x10] sm:$0xff] (!%p788_p5), %v1283_v0  ;;  %283 = vst [vmem:[%s1614_s21 + $0x18] sm:$0xff] (!%p788_p5), %v1283_v0 }
  0x8b   : > { %284 = vst [vmem:[%s1614_s21 + $0x20] sm:$0xff] (!%p788_p5), %v1283_v0  ;;  %285 = vst [vmem:[%s1614_s21 + $0x28] sm:$0xff] (!%p788_p5), %v1283_v0 }
  0x8c   : > { %286 = vst [vmem:[%s1614_s21 + $0x30] sm:$0xff] (!%p788_p5), %v1283_v0  ;;  %287 = vst [vmem:[%s1614_s21 + $0x38] sm:$0xff] (!%p788_p5), %v1283_v0 }
  0x8d   : > { %288 = vst [vmem:[%s1614_s21 + $0x40] sm:$0xff] (!%p788_p5), %v1283_v0  ;;  %289 = vst [vmem:[%s1614_s21 + $0x48] sm:$0xff] (!%p788_p5), %v1283_v0 }
  0x8e   : > { %290 = vst [vmem:[%s1614_s21 + $0x50] sm:$0xff] (!%p788_p5), %v1283_v0  ;;  %291 = vst [vmem:[%s1614_s21 + $0x58] sm:$0xff] (!%p788_p5), %v1283_v0 }
  0x8f   : > { %292 = vst [vmem:[%s1614_s21 + $0x60] sm:$0xff] (!%p788_p5), %v1283_v0  ;;  %293 = vst [vmem:[%s1614_s21 + $0x68] sm:$0xff] (!%p788_p5), %v1283_v0 }
  0x90   : > { %294 = vst [vmem:[%s1614_s21 + $0x70] sm:$0xff] %v1283_v0  ;;  %295 = vst [vmem:[%s1614_s21 + $0x78] sm:$0xff] %v1283_v0 }
  0x91 PF: > { %v1034_v1 = vld [vmem:[%s1597_s15] sm:$0xff]   ;;  %v1035_v2 = vld [vmem:[%s1597_s15 + $0x8] sm:$0xff]   ;;  %v1036_v3 = vld [vmem:[%s1597_s15 + $0x10] sm:$0xff]   ;;  %s1868_s4 = sld [smem:[#allocation11_spill]] }
  0x92   : > { %832 = vmatprep.subr.bf16.mxu0 %v1034_v1  ;;  %864 = vmatprep.subr.bf16.mxu1 %v1034_v1  ;;  %v1037_v4 = vld [vmem:[%s1597_s15 + $0x18] sm:$0xff]   ;;  %v1042_v5 = vld [vmem:[%s1590_s30] sm:$0xff]   ;;  %v1039_v8 = vld [vmem:[%s1597_s15 + $0x28] sm:$0xff]  }
  0x93   : > { %833 = vmatpush3.bf16.msra.mxu0 %v1034_v1  ;;  %872 = vmatpush3.bf16.msra.mxu1 %v1034_v1  ;;  %v1043_v6 = vld [vmem:[%s1590_s30 + $0x20] sm:$0xff]   ;;  %v1040_v9 = vld [vmem:[%s1597_s15 + $0x30] sm:$0xff]   ;;  %v1041_v10 = vld [vmem:[%s1597_s15 + $0x38] sm:$0xff]  }
  0x94   : > { %834 = vmatprep.subr.bf16.mxu0 %v1035_v2  ;;  %865 = vmatprep.subr.bf16.mxu1 %v1035_v2  ;;  %v1038_v7 = vld [vmem:[%s1597_s15 + $0x20] sm:$0xff]   ;;  %v1044_v11 = vld [vmem:[%s1590_s30 + $0x8] sm:$0xff]   ;;  %v1046_v13 = vld [vmem:[%s1590_s30 + $0x10] sm:$0xff]  }
  0x95   : > { %848 = vmatprep.mubr.bf16.mxu0 %v1042_v5  ;;  %856 = vmatprep.mubr.bf16.mxu1 %v1043_v6  ;;  %v1045_v12 = vld [vmem:[%s1590_s30 + $0x28] sm:$0xff]   ;;  %v1047_v14 = vld [vmem:[%s1590_s30 + $0x30] sm:$0xff]   ;;  %v1048_v15 = vld [vmem:[%s1590_s30 + $0x18] sm:$0xff]  }
  0x96   : > { %v1049_v16 = vld [vmem:[%s1590_s30 + $0x38] sm:$0xff]   ;;  %v298_v17 = vld [vmem:[%s1614_s21 + $0x10] sm:$0xff]  ;;  %v296_v19 = vld [vmem:[%s1614_s21] sm:$0xff] }
  0x97   : > { %835 = vmatpush3.bf16.msra.mxu0 %v1035_v2  ;;  %873 = vmatpush3.bf16.msra.mxu1 %v1035_v2  ;;  %v306_v18 = vld [vmem:[%s1614_s21 + $0x50] sm:$0xff]  ;;  %v304_v20 = vld [vmem:[%s1614_s21 + $0x40] sm:$0xff]  ;;  %v299_v23 = vld [vmem:[%s1614_s21 + $0x18] sm:$0xff]  ;;  %p805_p0 = scmp.ne.s32.totalorder %s1868_s4, 1 }
  0x98   : > { %836 = vmatprep.subr.bf16.mxu0 %v1036_v3  ;;  %866 = vmatprep.subr.bf16.mxu1 %v1036_v3  ;;  %v307_v24 = vld [vmem:[%s1614_s21 + $0x58] sm:$0xff]  ;;  %v297_v29 = vld [vmem:[%s1614_s21 + $0x8] sm:$0xff]  ;;  %v302_v41 = vld [vmem:[%s1614_s21 + $0x30] sm:$0xff] }
  0x99   : > { %v305_v30 = vld [vmem:[%s1614_s21 + $0x48] sm:$0xff]  ;;  %v310_v42 = vld [vmem:[%s1614_s21 + $0x70] sm:$0xff]  ;;  %v300_v43 = vld [vmem:[%s1614_s21 + $0x20] sm:$0xff] }
  0x9a   : > { %v308_v44 = vld [vmem:[%s1614_s21 + $0x60] sm:$0xff]  ;;  %v303_v47 = vld [vmem:[%s1614_s21 + $0x38] sm:$0xff]  ;;  %v301_v53 = vld [vmem:[%s1614_s21 + $0x28] sm:$0xff] }
  0x9b   : > { %837 = vmatpush3.bf16.msra.mxu0 %v1036_v3  ;;  %874 = vmatpush3.bf16.msra.mxu1 %v1036_v3  ;;  %v311_v48 = vld [vmem:[%s1614_s21 + $0x78] sm:$0xff]  ;;  %v309_v54 = vld [vmem:[%s1614_s21 + $0x68] sm:$0xff]  ;;  %v806_v2 = vld [vmem:[%s273_s1] ss:$0 sm:$0xff] (!%p805_p0) }
  0x9c   : > { %838 = vmatprep.subr.bf16.mxu0 %v1037_v4  ;;  %867 = vmatprep.subr.bf16.mxu1 %v1037_v4 }
  0x9f   : > { %839 = vmatpush3.bf16.msra.mxu0 %v1037_v4  ;;  %875 = vmatpush3.bf16.msra.mxu1 %v1037_v4 }
  0xa0   : > { %840 = vmatprep.subr.bf16.mxu0 %v1038_v7  ;;  %868 = vmatprep.subr.bf16.mxu1 %v1038_v7 }
  0xa3   : > { %841 = vmatpush3.bf16.msra.mxu0 %v1038_v7  ;;  %876 = vmatpush3.bf16.msra.mxu1 %v1038_v7 }
  0xa4   : > { %842 = vmatprep.subr.bf16.mxu0 %v1039_v8  ;;  %869 = vmatprep.subr.bf16.mxu1 %v1039_v8 }
  0xa7   : > { %843 = vmatpush3.bf16.msra.mxu0 %v1039_v8  ;;  %877 = vmatpush3.bf16.msra.mxu1 %v1039_v8 }
  0xa8   : > { %844 = vmatprep.subr.bf16.mxu0 %v1040_v9  ;;  %870 = vmatprep.subr.bf16.mxu1 %v1040_v9 }
  0xab   : > { %845 = vmatpush3.bf16.msra.mxu0 %v1040_v9  ;;  %878 = vmatpush3.bf16.msra.mxu1 %v1040_v9 }
  0xac   : > { %846 = vmatprep.subr.bf16.mxu0 %v1041_v10  ;;  %871 = vmatprep.subr.bf16.mxu1 %v1041_v10 }
  0xaf   : > { %847 = vmatpush3.bf16.msra.mxu0 %v1041_v10  ;;  %879 = vmatpush3.bf16.msra.mxu1 %v1041_v10 }
  0xb2   : > { %849 = vmatmul.mubr.bf16.vlgmr.msra.gmra.mrb[0].mxu0 %v1044_v11  ;;  %857 = vmatmul.mubr.bf16.vlgmr.msra.gmra.mrb[0].mxu1 %v1045_v12 }
  0xb3   : > { %852 = vmatprep.mubr.bf16.mxu0 %v1046_v13  ;;  %860 = vmatprep.mubr.bf16.mxu1 %v1047_v14 }
  0xba   : > { %853 = vmatmul.mubr.bf16.gmra.mrb[4].mxu0 %v1048_v15  ;;  %861 = vmatmul.mubr.bf16.gmra.mrb[4].mxu1 %v1049_v16 }
 0x185   : > { %v850_v21 = vpop.f32.mrb[0].mxu0  ;;  %v858_v22 = vpop.f32.mrb[0].mxu1 }
 0x186   : > { %v539_v25 = vadd.f32 %v850_v21, %v298_v17  ;;  %v547_v26 = vadd.f32 %v858_v22, %v306_v18  ;;  %v474_v27 = vpop.f32.mrb[1].mxu0  ;;  %v506_v28 = vpop.f32.mrb[1].mxu1 }
 0x187   : > { %v537_v31 = vadd.f32 %v474_v27, %v296_v19  ;;  %v545_v32 = vadd.f32 %v506_v28, %v304_v20  ;;  %v851_v33 = vpop.f32.mrb[2].mxu0  ;;  %v859_v34 = vpop.f32.mrb[2].mxu1 }
 0x188   : > { %555 = vst [vmem:[%s1614_s21 + $0x10] sm:$0xff] %v539_v25  ;;  %563 = vst [vmem:[%s1614_s21 + $0x50] sm:$0xff] %v547_v26  ;;  %v540_v35 = vadd.f32 %v851_v33, %v299_v23  ;;  %v548_v36 = vadd.f32 %v859_v34, %v307_v24  ;;  %v477_v37 = vpop.f32.mrb[3].mxu0  ;;  %v509_v38 = vpop.f32.mrb[3].mxu1 }
 0x189   : > { %553 = vst [vmem:[%s1614_s21] sm:$0xff] %v537_v31  ;;  %561 = vst [vmem:[%s1614_s21 + $0x40] sm:$0xff] %v545_v32  ;;  %v538_v39 = vadd.f32 %v477_v37, %v297_v29  ;;  %v546_v40 = vadd.f32 %v509_v38, %v305_v30 }
 0x18a   : > { %556 = vst [vmem:[%s1614_s21 + $0x18] sm:$0xff] %v540_v35  ;;  %564 = vst [vmem:[%s1614_s21 + $0x58] sm:$0xff] %v548_v36 }
 0x18b   : > { %554 = vst [vmem:[%s1614_s21 + $0x8] sm:$0xff] %v538_v39  ;;  %562 = vst [vmem:[%s1614_s21 + $0x48] sm:$0xff] %v546_v40 }
 0x18d   : > { %v854_v45 = vpop.f32.mrb[4].mxu0  ;;  %v862_v46 = vpop.f32.mrb[4].mxu1  ;;  %572 = sbr.rel (%p805_p0) target bundleno = 415 (0x19f), region = 48 }
 0x18e   : > { %v543_v49 = vadd.f32 %v854_v45, %v302_v41  ;;  %v551_v50 = vadd.f32 %v862_v46, %v310_v42  ;;  %v490_v51 = vpop.f32.mrb[5].mxu0  ;;  %v522_v52 = vpop.f32.mrb[5].mxu1 }
 0x18f   : > { %v541_v55 = vadd.f32 %v490_v51, %v300_v43  ;;  %v549_v56 = vadd.f32 %v522_v52, %v308_v44  ;;  %v855_v57 = vpop.f32.mrb[6].mxu0  ;;  %v863_v58 = vpop.f32.mrb[6].mxu1  ;;  %v575_v6 = vld [vmem:[%s1614_s21 + $0x10] sm:$0xff] (!%p805_p0) }
 0x190   : > { %559 = vst [vmem:[%s1614_s21 + $0x30] sm:$0xff] %v543_v49  ;;  %567 = vst [vmem:[%s1614_s21 + $0x70] sm:$0xff] %v551_v50  ;;  %v544_v59 = vadd.f32 %v855_v57, %v303_v47  ;;  %v552_v60 = vadd.f32 %v863_v58, %v311_v48  ;;  %v493_v61 = vpop.f32.mrb[7].mxu0  ;;  %v525_v62 = vpop.f32.mrb[7].mxu1  ;;  %v573_v1 = vld [vmem:[%s1614_s21] sm:$0xff] (!%p805_p0)  ;;  %v598_v9 = vadd.f32 (!%p805_p0), %v806_v2, %v575_v6  ;;  %v583_v20 = vld [vmem:[%s1614_s21 + $0x50] sm:$0xff] (!%p805_p0) }
 0x191   : > { %557 = vst [vmem:[%s1614_s21 + $0x20] sm:$0xff] %v541_v55  ;;  %565 = vst [vmem:[%s1614_s21 + $0x60] sm:$0xff] %v549_v56  ;;  %v542_v63 = vadd.f32 %v493_v61, %v301_v53  ;;  %v550_v0 = vadd.f32 %v525_v62, %v309_v54  ;;  %v596_v4 = vadd.f32 (!%p805_p0), %v806_v2, %v573_v1  ;;  %v576_v7 = vld [vmem:[%s1614_s21 + $0x18] sm:$0xff] (!%p805_p0)  ;;  %v581_v18 = vld [vmem:[%s1614_s21 + $0x40] sm:$0xff] (!%p805_p0) }
 0x192   : > { %560 = vst [vmem:[%s1614_s21 + $0x38] sm:$0xff] %v544_v59  ;;  %568 = vst [vmem:[%s1614_s21 + $0x78] sm:$0xff] %v552_v60  ;;  %v574_v3 = vld [vmem:[%s1614_s21 + $0x8] sm:$0xff] (!%p805_p0)  ;;  %v599_v10 = vadd.f32 (!%p805_p0), %v806_v2, %v576_v7  ;;  %v604_v21 = vadd.f32 (!%p805_p0), %v806_v2, %v581_v18  ;;  %v606_v23 = vadd.f32 (!%p805_p0), %v806_v2, %v583_v20  ;;  %v584_v24 = vld [vmem:[%s1614_s21 + $0x58] sm:$0xff] (!%p805_p0) }
 0x193   : > { %558 = vst [vmem:[%s1614_s21 + $0x28] sm:$0xff] %v542_v63  ;;  %566 = vst [vmem:[%s1614_s21 + $0x68] sm:$0xff] %v550_v0  ;;  %v597_v5 = vadd.f32 (!%p805_p0), %v806_v2, %v574_v3  ;;  %v582_v19 = vld [vmem:[%s1614_s21 + $0x48] sm:$0xff] (!%p805_p0)  ;;  %v607_v27 = vadd.f32 (!%p805_p0), %v806_v2, %v584_v24 }
 0x194   : > { %612 = vst [vmem:[%s1614_s21] sm:$0xff] %v596_v4  ;;  %614 = vst [vmem:[%s1614_s21 + $0x10] sm:$0xff] %v598_v9  ;;  %v605_v22 = vadd.f32 %v806_v2, %v582_v19 }
 0x195   : > { %613 = vst [vmem:[%s1614_s21 + $0x8] sm:$0xff] %v597_v5  ;;  %615 = vst [vmem:[%s1614_s21 + $0x18] sm:$0xff] %v599_v10 }
 0x196   : > { %620 = vst [vmem:[%s1614_s21 + $0x40] sm:$0xff] %v604_v21  ;;  %621 = vst [vmem:[%s1614_s21 + $0x48] sm:$0xff] %v605_v22 }
 0x197   : > { %v579_v13 = vld [vmem:[%s1614_s21 + $0x30] sm:$0xff]  ;;  %622 = vst [vmem:[%s1614_s21 + $0x50] sm:$0xff] %v606_v23  ;;  %623 = vst [vmem:[%s1614_s21 + $0x58] sm:$0xff] %v607_v27 }
 0x198   : > { %v577_v8 = vld [vmem:[%s1614_s21 + $0x20] sm:$0xff]  ;;  %v602_v16 = vadd.f32 %v806_v2, %v579_v13  ;;  %v587_v30 = vld [vmem:[%s1614_s21 + $0x70] sm:$0xff] }
 0x199   : > { %v600_v11 = vadd.f32 %v806_v2, %v577_v8  ;;  %v580_v14 = vld [vmem:[%s1614_s21 + $0x38] sm:$0xff]  ;;  %v585_v25 = vld [vmem:[%s1614_s21 + $0x60] sm:$0xff]  ;;  %v610_v32 = vadd.f32 %v806_v2, %v587_v30 }
 0x19a   : > { %v578_v12 = vld [vmem:[%s1614_s21 + $0x28] sm:$0xff]  ;;  %v603_v17 = vadd.f32 %v806_v2, %v580_v14  ;;  %618 = vst [vmem:[%s1614_s21 + $0x30] sm:$0xff] %v602_v16  ;;  %v608_v28 = vadd.f32 %v806_v2, %v585_v25  ;;  %v588_v31 = vld [vmem:[%s1614_s21 + $0x78] sm:$0xff] }
 0x19b   : > { %v601_v15 = vadd.f32 %v806_v2, %v578_v12  ;;  %616 = vst [vmem:[%s1614_s21 + $0x20] sm:$0xff] %v600_v11  ;;  %v586_v26 = vld [vmem:[%s1614_s21 + $0x68] sm:$0xff]  ;;  %v611_v33 = vadd.f32 %v806_v2, %v588_v31  ;;  %626 = vst [vmem:[%s1614_s21 + $0x70] sm:$0xff] %v610_v32 }
 0x19c   : > { %619 = vst [vmem:[%s1614_s21 + $0x38] sm:$0xff] %v603_v17  ;;  %v609_v29 = vadd.f32 %v806_v2, %v586_v26  ;;  %624 = vst [vmem:[%s1614_s21 + $0x60] sm:$0xff] %v608_v28 }
 0x19d   : > { %617 = vst [vmem:[%s1614_s21 + $0x28] sm:$0xff] %v601_v15  ;;  %627 = vst [vmem:[%s1614_s21 + $0x78] sm:$0xff] %v611_v33 }
 0x19e   : > { %625 = vst [vmem:[%s1614_s21 + $0x68] sm:$0xff] %v609_v29 }
 0x19f PF: > { %s1869_s30 = sld [smem:[#allocation12_spill]]  ;;  %s1870_s5 = sld [smem:[#allocation16_spill]] }
 0x1a0   : > { %s644_s8 = sshll.u32 %s1614_s21, 4  ;;  %s1871_s1 = sld [smem:[#allocation20_spill]]  ;;  %s1722_s8 = int_to_ptr.vmem [resolvable:$true] %s644_s8 }
 0x1a1   : > { %s1731_s4 = scalar_lea.sflag [#allocation4], %s266_s28  ;;  %s1110_s29 = scalar_lea.vmem %s1722_s8, 2048 }
 0x1a2   : > { %p1111_p13 = scmp.ne.s32.totalorder %s1722_s8, %s1110_s29 }
 0x1a5   : > { %s815_s0 = sshll.u32 %s1869_s30, 5  ;;  %p1872_p2 = scmp.ne.s32.totalorder %s1870_s5, 0 }
 0x1a6   : > { %s641_s15 = sadd.s32 %s1256_s22, %s815_s0  ;;  %s1284_s22 = smov [#allocation7]  }
 0x1a7   : > { %s810_s9 = sshll.u32 %s641_s15, 7  ;;  %p1112_p10 = pnand %p1111_p13, %p1872_p2 }
 0x1a8   : > { %s1727_s26 = scalar_lea.hbm %s1871_s1, %s810_s9  ;;  %s1114_s21 = sshll.u32 %s1284_s22, 4  ;;  %s1115_s21 = int_to_ptr.vmem [resolvable:$false] %s1114_s21 }
 0x1a9   : > { %p1113_p12 = pneg %p1112_p10  ;;  %s1116_s3 = scalar_lea.vmem %s1115_s21, 4096 }
 0x1aa   : > { %p1117_p11 = scmp.lt.s32.totalorder %s1722_s8, %s1115_s21  ;;  %p1118_p3 = scmp.lt.s32.totalorder %s1116_s3, %s1110_s29 }
 0x1ac   : > { %p1119_p4 = por %p1118_p3, %p1117_p11 }
 0x1ae   : > { %p1120_p8 = pnand %p1119_p4, %p1113_p12 }
 0x1b0   : > { %1123 = shalt.err (!%p1120_p8)
}
 0x1b1   : > { %s1124_s28 = scalar_lea.hbm %s1727_s26, 2048  ;;  %s1128_s15 = scalar_lea.hbm %s1871_s1, 8192 }
 0x1b2   : > { %p1125_p6 = scmp.ne.s32.totalorder %s1727_s26, %s1124_s28  ;;  %p1129_p1 = scmp.lt.u32.totalorder %s1727_s26, %s1871_s1 }
 0x1b3   : > { %p1130_p5 = scmp.lt.u32.totalorder %s1128_s15, %s1124_s28  ;;  %p1132_p13 = scmp.lt.u32.totalorder %s1124_s28, %s1727_s26 }
 0x1b4   : > { %p1126_p9 = pnand %p1125_p6, %p1872_p2 }
 0x1b5   : > { %p1131_p0 = por %p1130_p5, %p1129_p1 }
 0x1b6   : > { %p1127_p7 = pneg %p1126_p9 }
 0x1b7   : > { %p1133_p10 = por %p1132_p13, %p1131_p0 }
 0x1b9   : > { %p1134_p12 = pnand %p1133_p10, %p1127_p7 }
 0x1bb   : > { %1137 = shalt.err (!%p1134_p12)
}
 0x1bc   : > { %s1285_s18 = smov 128   ;;  %s1286_s29 = smov 256  }
 0x1bd   : > { %s1287_s22 = smov 8  }
 0x1be   : > { %884 = dma.vmem_to_hbm [thread:$0]  (%p1872_p2), %s1722_s8, 2048, %s1727_s26, %s1731_s4, %s1285_s18, %s1286_s29, %s1287_s22  }
 0x1bf PF: > { %p898_p11 = scmp.ge.s32.totalorder %s1276_s27, 2  ;;  %s659_s21 = sand.u32 1, %s1216_s12  }
 0x1c0   : > { %p1873_p3 = scmp.ne.s32.totalorder %s1858_s23, 0  ;;  %s660_s3 = scalar_lea.sflag [#allocation4], %s659_s21 }
 0x1c2   : > { %p894_p4 = pnand %p898_p11, %p1873_p3 }
 0x1c4   : > { %1211 = dma.done.wait (!%p894_p4), %s660_s3, 2048  }
 0x1c5   : > { %1213 = vsyncadd (!%p894_p4), %s660_s3, 4294965248  ;;  %s22_s27 = sadd.s32 1, %s1276_s27   ;;  %s1875_s23 = sld [smem:[#allocation13_spill]] }
 0x1c6   : > { %p1760_p8 = scmp.ge.s32.totalorder %s22_s27, 10   ;;  %s1876_s5 = sld [smem:[#allocation14_spill]] }
 0x1c7   : > { %s1877_s8 = sld [smem:[#allocation15_spill]]  ;;  %s1878_s26 = sld [smem:[#allocation17_spill]] }
 0x1c8   : > { %s1879_s12 = smov %s1220_s13  ;;  %s1880_s13 = smov %s1224_s14 }
 0x1c9   : > { %s1881_s14 = smov %s1530_s6  ;;  %s1882_s15 = smov %s1232_s16 }
 0x1ca   : > { %s1883_s16 = smov %s1236_s17  ;;  %s1884_s17 = smov %s1516_s10 }
 0x1cb   : > { %s1885_s18 = smov %s1244_s19  ;;  %s1886_s19 = smov %s1248_s20 }
 0x1cc   : > { %s1887_s20 = smov %s1527_s11  ;;  %s1888_s21 = smov %s1264_s24 }
 0x1cd   : > { %s1889_s22 = smov %s1268_s25  ;;  %s1890_s24 = smov %s1876_s5 }
 0x1ce   : > { %s1891_s25 = smov %s1877_s8  ;;  %21 = sbr.rel (!%p1760_p8) target bundleno = 17 (0x11), region = 101 }
 0x1d5   :  { %665 = vsyncpa [#allocation3], 1 }
 0x1d6   :  { %667 = vsyncpa [#allocation3 + $0x1], 1 }
 0x1d7   :  { %668 = vsyncpa [#allocation6], 1 }
 0x1d8   :  { %670 = vsyncpa [#allocation6 + $0x1], 1 }
 0x1d9   :  { %671 = vsyncpa [#allocation4], 1 }
 0x1da   :  { %673 = vsyncpa [#allocation4 + $0x1], 1 }

</bundles_post_ra>
